<compile_context>
chip_gen: v7x
topology: tpu7x:2x2x1
jax: 0.10.0
libtpu: 0.0.40
codegen_flags: <defaults>
</compile_context>

<pallas_src>
import jax
import jax.numpy as jnp
from jax.experimental import pallas as pl
from jax.experimental.pallas import tpu as pltpu


def _one_error_kernel(scores_ref, labels_ref, out_ref):
    scores = scores_ref[...].astype(jnp.float32)                # (TN, L)
    labels_nonzero = (labels_ref[...] != 0).astype(jnp.int32)   # (TN, L)
    tn, num_labels = scores.shape

    # XLU reduction #1: per-row maximum score.
    row_max = jnp.max(scores, axis=1, keepdims=True)            # (TN, 1)
    is_max = scores >= row_max                                  # (TN, L)

    # Encode (lane_index * 2 + label_nonzero) at max positions, a large sentinel
    # elsewhere.  XLU reduction #2: the per-row minimum picks the FIRST maximal
    # position (numpy argmax tie-break); its low bit is the label-nonzero flag
    # at that position.
    lane_iota = jax.lax.broadcasted_iota(jnp.int32, (tn, num_labels), 1)
    encoded = jnp.where(is_max, lane_iota * 2 + labels_nonzero, 2 * num_labels)
    first_enc = jnp.min(encoded, axis=1, keepdims=True)         # (TN, 1)

    # error = 1 when the label at the argmax position is zero.
    err = ((first_enc & 1) == 0).astype(jnp.float32)            # (TN, 1)
    block_sum = jnp.sum(err)                                    # scalar

    # lane-aligned per-block partial sum (avoids masked partial stores)
    out_ref[...] = jnp.full((1, 8, 128), block_sum, dtype=jnp.float32)


def one_error_pallas(predict_probs: jax.Array, true_labels: jax.Array,
                     *, tile_n: int = 512) -> jax.Array:
    """Mirrors One_error.forward(predict_probs, true_labels)."""
    assert predict_probs.shape == true_labels.shape
    assert predict_probs.ndim == 2
    n, num_labels = predict_probs.shape

    # Tile the sample axis; keep 2 inputs x 2 pipeline buffers x tile_n x L well
    # under the scoped-VMEM limit (32 MiB default; 64 MiB physical on v7x).
    tn = min(tile_n, max(8, ((n + 7) // 8) * 8))
    n_pad = ((n + tn - 1) // tn) * tn
    if n_pad != n:
        pad = n_pad - n
        predict_probs = jnp.pad(predict_probs, ((0, pad), (0, 0)))
        # padded rows get label == 1 everywhere -> they contribute zero error
        true_labels = jnp.pad(true_labels, ((0, pad), (0, 0)), constant_values=1)
    num_blocks = n_pad // tn

    partial = pl.pallas_call(
        _one_error_kernel,
        out_shape=jax.ShapeDtypeStruct((num_blocks, 8, 128), jnp.float32),
        grid=(num_blocks,),
        in_specs=[
            pl.BlockSpec((tn, num_labels), lambda i: (i, 0)),
            pl.BlockSpec((tn, num_labels), lambda i: (i, 0)),
        ],
        out_specs=pl.BlockSpec((1, 8, 128), lambda i: (i, 0, 0)),
        compiler_params=pltpu.CompilerParams(
            dimension_semantics=("parallel",)),
    )(predict_probs, true_labels)

    # Final mean over the TRUE sample count (padded rows contribute exactly zero).
    return jnp.sum(partial[:, 0, 0]) / jnp.float32(n)


def _one_error_ref(predict_probs, true_labels):
    """Pure-JAX reference matching the numpy spec."""
    col = jnp.argmax(predict_probs, axis=1)
    picked = jnp.take_along_axis(true_labels, col[:, None], axis=1)[:, 0]
    return jnp.mean((picked == 0).astype(jnp.float32))


if __name__ == "__main__":
    key = jax.random.PRNGKey(0)
    k1, k2, k3, k4 = jax.random.split(key, 4)

    # Case 1: aligned small shapes (samples x labels)
    N, L = 8, 128
    predict_probs = jax.random.uniform(k1, (N, L), dtype=jnp.float32)
    true_labels = (jax.random.uniform(k2, (N, L)) < 0.1).astype(jnp.float32)

    result = one_error_pallas(predict_probs, true_labels)
    jax.block_until_ready(result)
    expected = _one_error_ref(predict_probs, true_labels)
    assert jnp.allclose(result, expected, atol=1e-6), (result, expected)

    # Case 2: unaligned N / L and integer labels (exercises the padding path)
    N2, L2 = 20, 200
    probs2 = jax.random.uniform(k3, (N2, L2), dtype=jnp.float32)
    labels2 = (jax.random.uniform(k4, (N2, L2)) < 0.05).astype(jnp.int32)

    result2 = one_error_pallas(probs2, labels2)
    jax.block_until_ready(result2)
    expected2 = _one_error_ref(probs2, labels2)
    assert jnp.allclose(result2, expected2, atol=1e-6), (result2, expected2)

    print("KERNEL_OK")
</pallas_src>

<mosaic_0001>
module attributes {stable_mosaic.version = 11 : i64} {
  func.func @_one_error_kernel(%arg0: i32, %arg1: memref<8x128xf32, #tpu.memory_space<vmem>>, %arg2: memref<8x128xf32, #tpu.memory_space<vmem>>, %arg3: memref<1x8x128xf32, #tpu.memory_space<vmem>>) attributes {dimension_semantics = [#tpu.dimension_semantics<parallel>], iteration_bounds = array<i64: 1>, scalar_prefetch = 0 : i64, scratch_operands = 0 : i64, tpu.core_type = #tpu.core_type<tc>, window_params = [{transform_indices = @transform_0, window_bounds = array<i64: 8, 128>}, {transform_indices = @transform_1, window_bounds = array<i64: 8, 128>}, {transform_indices = @transform_2, window_bounds = array<i64: 1, 8, 128>}]} {
    %c0 = arith.constant 0 : index
    %c0_0 = arith.constant 0 : index
    %0 = vector.load %arg1[%c0, %c0_0] : memref<8x128xf32, #tpu.memory_space<vmem>>, vector<8x128xf32>
    %c0_1 = arith.constant 0 : index
    %c0_2 = arith.constant 0 : index
    %1 = vector.load %arg2[%c0_1, %c0_2] : memref<8x128xf32, #tpu.memory_space<vmem>>, vector<8x128xf32>
    %cst = arith.constant 0.000000e+00 : f32
    %2 = vector.broadcast %cst : f32 to vector<8x128xf32>
    %3 = arith.cmpf one, %1, %2 : vector<8x128xf32>
    %4 = arith.extui %3 : vector<8x128xi1> to vector<8x128xi32>
    %cst_3 = arith.constant dense<0xFF800000> : vector<8xf32>
    %5 = vector.multi_reduction <maximumf>, %0, %cst_3 [1] : vector<8x128xf32> to vector<8xf32>
    %6 = vector.shape_cast %5 : vector<8xf32> to vector<8x1xf32>
    %7 = vector.broadcast %6 : vector<8x1xf32> to vector<8x128xf32>
    %8 = arith.cmpf oge, %0, %7 : vector<8x128xf32>
    %9 = tpu.iota {dimensions = array<i32: 1>} : vector<8x128xi32>
    %c2_i32 = arith.constant 2 : i32
    %10 = vector.broadcast %c2_i32 : i32 to vector<8x128xi32>
    %11 = arith.muli %9, %10 : vector<8x128xi32>
    %12 = arith.addi %11, %4 : vector<8x128xi32>
    %c256_i32 = arith.constant 256 : i32
    %13 = vector.broadcast %c256_i32 : i32 to vector<8x128xi32>
    %14 = arith.select %8, %12, %13 : vector<8x128xi1>, vector<8x128xi32>
    %cst_4 = arith.constant dense<2147483647> : vector<8xi32>
    %15 = vector.multi_reduction <minsi>, %14, %cst_4 [1] : vector<8x128xi32> to vector<8xi32>
    %16 = vector.shape_cast %15 : vector<8xi32> to vector<8x1xi32>
    %c1_i32 = arith.constant 1 : i32
    %17 = vector.broadcast %c1_i32 : i32 to vector<8x1xi32>
    %18 = arith.andi %16, %17 : vector<8x1xi32>
    %c0_i32 = arith.constant 0 : i32
    %19 = vector.broadcast %c0_i32 : i32 to vector<8x1xi32>
    %20 = arith.cmpi eq, %18, %19 : vector<8x1xi32>
    %21 = arith.extui %20 : vector<8x1xi1> to vector<8x1xi32>
    %22 = arith.sitofp %21 : vector<8x1xi32> to vector<8x1xf32>
    %23 = vector.shape_cast %22 : vector<8x1xf32> to vector<1x8x1xf32>
    %cst_5 = arith.constant dense<0.000000e+00> : vector<1xf32>
    %24 = vector.multi_reduction <add>, %23, %cst_5 [1, 2] : vector<1x8x1xf32> to vector<1xf32>
    %25 = vector.shape_cast %24 : vector<1xf32> to vector<1x1x1xf32>
    %26 = vector.extract %25[0, 0, 0] : f32 from vector<1x1x1xf32>
    %27 = vector.broadcast %26 : f32 to vector<1x8x128xf32>
    %c0_6 = arith.constant 0 : index
    %c0_7 = arith.constant 0 : index
    %c0_8 = arith.constant 0 : index
    %28 = vector.load %arg3[%c0_6, %c0_7, %c0_8] : memref<1x8x128xf32, #tpu.memory_space<vmem>>, vector<1x8x128xf32>
    tpu.vector_store %arg3[%c0_6, %c0_7, %c0_8], %27 {strides = array<i32>} : memref<1x8x128xf32, #tpu.memory_space<vmem>>, vector<1x8x128xf32>,
    return
  }
  func.func @transform_0(%arg0: i32) -> (i32, i32) {
    %c0_i32 = arith.constant 0 : i32
    %c0_i32_0 = arith.constant 0 : i32
    return %arg0, %c0_i32 : i32, i32
  }
  func.func @transform_1(%arg0: i32) -> (i32, i32) {
    %c0_i32 = arith.constant 0 : i32
    %c0_i32_0 = arith.constant 0 : i32
    return %arg0, %c0_i32 : i32, i32
  }
  func.func @transform_2(%arg0: i32) -> (i32, i32, i32) {
    %c0_i32 = arith.constant 0 : i32
    %c0_i32_0 = arith.constant 0 : i32
    %c0_i32_1 = arith.constant 0 : i32
    return %arg0, %c0_i32, %c0_i32_0 : i32, i32, i32
  }
}

</mosaic_0001>

<bundles_post_ra>
// kernel: tpu_custom_call.1
= control target key start
LH: loop header
LB: loop body
LE: loop exit
PB: predicated region body
PF: predicated region fallthrough
CT: control target
= control target key end

     0   :  { %7 = vsyncpa [#allocation3], 0  ;;  %s231_s0 = inlined_call_operand.hbm [shape: f32[8,128], index: 0, kind: input, shape index: {}]   ;;  %s232_s1 = inlined_call_operand.hbm [shape: f32[8,128], index: 1, kind: input, shape index: {}]   ;;  %s233_s2 = inlined_call_operand.hbm [shape: f32[1,8,128], index: 2, kind: output, shape index: {}]  }
   0x1   :  { %8 = vsyncpa [#allocation6], 0 }
   0x2   :  { %9 = vsyncpa [#allocation4], 0  ;;  %s175_s9 = smov [#allocation2]   ;;  %s176_s11 = smov [#allocation5]  }
   0x3   :  { %s16_s10 = sshll.u32 %s175_s9, 4  ;;  %s26_s12 = sshll.u32 %s176_s11, 4  ;;  %s17_s10 = int_to_ptr.vmem [resolvable:$true] %s16_s10  ;;  %s27_s12 = int_to_ptr.vmem [resolvable:$true] %s26_s12 }
   0x4   :  { %s103_s15 = scalar_lea.hbm %s231_s0, 128 }
   0x5   :  { %p104_p0 = scmp.ne.s32.totalorder %s231_s0, %s103_s15  ;;  %p107_p1 = scmp.lt.u32.totalorder %s103_s15, %s231_s0 }
   0x7   :  { %p109_p2 = pnand %p107_p1, %p104_p0 }
   0x9   :  { %112 = shalt.err (!%p109_p2)
}
   0xa   :  { %s113_s20 = scalar_lea.vmem %s17_s10, 128  ;;  %p118_p4 = scmp.lt.s32.totalorder %s17_s10, %s17_s10 }
   0xb   :  { %p114_p3 = scmp.ne.s32.totalorder %s17_s10, %s113_s20  ;;  %p119_p5 = scmp.lt.s32.totalorder %s113_s20, %s113_s20 }
   0xd   :  { %p120_p6 = por %p119_p5, %p118_p4 }
   0xf   :  { %p121_p7 = pnand %p120_p6, %p114_p3 }
  0x11   :  { %124 = shalt.err (!%p121_p7)
}
  0x12   :  { %19 = dma.hbm_to_vmem [thread:$0]  %s231_s0, 128, %s17_s10, [#allocation3]  }
  0x13   :  { %s125_s25 = scalar_lea.hbm %s232_s1, 128 }
  0x14   :  { %p126_p8 = scmp.ne.s32.totalorder %s232_s1, %s125_s25  ;;  %p129_p9 = scmp.lt.u32.totalorder %s125_s25, %s232_s1 }
  0x16   :  { %p131_p10 = pnand %p129_p9, %p126_p8 }
  0x18   :  { %134 = shalt.err (!%p131_p10)
}
  0x19   :  { %s135_s30 = scalar_lea.vmem %s27_s12, 128  ;;  %p140_p12 = scmp.lt.s32.totalorder %s27_s12, %s27_s12 }
  0x1a   :  { %p136_p11 = scmp.ne.s32.totalorder %s27_s12, %s135_s30  ;;  %p141_p13 = scmp.lt.s32.totalorder %s135_s30, %s135_s30 }
  0x1c   :  { %p142_p0 = por %p141_p13, %p140_p12 }
  0x1e   :  { %p143_p1 = pnand %p142_p0, %p136_p11 }
  0x20   :  { %146 = shalt.err (!%p143_p1)
}
  0x21   :  { %29 = dma.hbm_to_vmem [thread:$0]  %s232_s1, 128, %s27_s12, [#allocation6]  }
  0x22   :  { %169 = dma.done.wait [#allocation3], 128  }
  0x23   :  { %170 = vsyncadd [#allocation3], 4294967168 }
  0x24   :  { %171 = dma.done.wait [#allocation6], 128  }
  0x25   :  { %172 = vsyncadd [#allocation6], 4294967168  ;;  %v36_v0 = vld [vmem:[#allocation2] sm:$0xff]  ;;  %v43_v1 = vlaneseq  ;;  %v37_v2 = vld [vmem:[#allocation5] sm:$0xff]  ;;  %v177_v5 = vmov 0   ;;  %vm66_vm3 = vcmask 7168  }
  0x26   :  { %40 = vmax.xlane.f32.xlu0 %v36_v0  ;;  %vm38_vm0 = vcmp.ne.f32.partialorder %v37_v2, 0.0  ;;  %v178_v22 = vmov 0.0   ;;  %s179_s1 = smov [#allocation7]  }
  0x27   :  { %v44_v3 = vand.u32 127, %v43_v1  ;;  %v39_v6 = vsel %vm38_vm0, 1, %v177_v5  ;;  %s85_s4 = sshll.u32 %s179_s1, 4  ;;  %s86_s4 = int_to_ptr.vmem [resolvable:$true] %s85_s4 }
  0x28   :  { %s147_s6 = scalar_lea.vmem %s86_s4, 128  ;;  %p152_p3 = scmp.lt.s32.totalorder %s86_s4, %s86_s4 }
  0x29   :  { %v45_v4 = vmul.u32 2, %v44_v3  ;;  %p148_p2 = scmp.ne.s32.totalorder %s86_s4, %s147_s6  ;;  %p153_p4 = scmp.lt.s32.totalorder %s147_s6, %s147_s6 }
  0x2b   :  { %v46_v7 = vadd.s32 %v45_v4, %v39_v6  ;;  %p154_p5 = por %p153_p4, %p152_p3 }
  0x2d   :  { %p155_p6 = pnand %p154_p5, %p148_p2 }
  0xb3   :  { %v41_v8 = vpop.xlane.xlu0 %40 }
  0xb4   :  { %vm42_vm1 = vcmp.ge.f32.partialorder %v36_v0, %v41_v8 }
  0xb5   :  { %v47_v9 = vsel %vm42_vm1, %v46_v7, 256 }
  0xb6   :  { %v49_v10 = vshra.s32 %v47_v9, 16  ;;  %v48_v12 = vand.u32 65535, %v47_v9 }
  0xb8   :  { %v51_v11 = vcvt.s32.f32 %v49_v10  ;;  %v50_v14 = vcvt.s32.f32 %v48_v12 }
  0xba   :  { %52 = vmin.xlane.f32.xlu0 %v51_v11 }
 0x147   :  { %v53_v13 = vpop.xlane.xlu0 %52 }
 0x148   :  { %vm54_vm2 = vcmp.eq.f32.partialorder %v51_v11, %v53_v13  ;;  %v59_v16 = vcvt.f32.s32 %v53_v13 }
 0x149   :  { %v55_v15 = vsel %vm54_vm2, %v50_v14, inf }
 0x14a   :  { %56 = vmin.xlane.f32.xlu1 %v55_v15  ;;  %v60_v18 = vshll.u32 %v59_v16, 16 }
 0x1d7   :  { %v57_v17 = vpop.xlane.xlu1 %56 }
 0x1d8   :  { %v58_v19 = vcvt.f32.s32 %v57_v17 }
 0x1da   :  { %v61_v20 = vadd.s32 %v60_v18, %v58_v19 }
 0x1dc   :  { %v62_v21 = vand.u32 1, %v61_v20 }
 0x1de   :  { %vm63_vm4 = vcmp.eq.s32.totalorder %v62_v21, 0 }
 0x1df   :  { %v95_v23 = vsel %vm63_vm4, 1.0, %v178_v22 }
 0x1e0   :  { %v67_v24 = vsel %vm66_vm3, %v95_v23, 0.0 }
 0x1e1   :  { %68 = vadd.xlane.f32.xlu1 %v67_v24 }
 0x26e   :  { %v69_v25 = vpop.xlane.xlu1 %68 }
 0x26f   :  { %v70_v26 = vrot.slane %v69_v25, 4 }
 0x271   :  { %v71_v27 = vadd.f32 %v70_v26, %v69_v25 }
 0x273   :  { %v72_v28 = vrot.slane %v71_v27, 2 }
 0x275   :  { %v73_v29 = vadd.f32 %v72_v28, %v71_v27 }
 0x277   :  { %v74_v30 = vrot.slane %v73_v29, 1 }
 0x279   :  { %v75_v31 = vadd.f32 %v74_v30, %v73_v29 }
 0x27b   :  { %96 = vpush %v75_v31 }
 0x2ac   :  { %s97_s5 = spop %96 }
 0x2ad   :  { %v77_v32 = vstv %s97_s5 }
 0x2ae   :  { %78 = vst [vmem:[#allocation7] sm:$0xff] %v77_v32 }
 0x2af   :  { %158 = shalt.err (!%p155_p6)
}
 0x2b0   :  { %s159_s9 = scalar_lea.hbm %s233_s2, 128 }
 0x2b1   :  { %p160_p7 = scmp.ne.s32.totalorder %s233_s2, %s159_s9  ;;  %p163_p8 = scmp.lt.u32.totalorder %s159_s9, %s233_s2 }
 0x2b3   :  { %p165_p9 = pnand %p163_p8, %p160_p7 }
 0x2b5   :  { %168 = shalt.err (!%p165_p9)
}
 0x2b6   :  { %88 = dma.vmem_to_hbm [thread:$0]  %s86_s4, 128, %s233_s2, [#allocation4]  }
 0x2b7   :  { %173 = dma.done.wait [#allocation4], 128  }
 0x2b8   :  { %174 = vsyncadd [#allocation4], 4294967168 }
 0x2b9   :  { %92 = vsyncpa [#allocation3], 1 }
 0x2ba   :  { %93 = vsyncpa [#allocation6], 1 }
 0x2bb   :  { %94 = vsyncpa [#allocation4], 1 }

</bundles_post_ra>
